<compile_context>
chip_gen: v5e
topology: v5e:2x2
jax: 0.10.0
libtpu: 0.0.40
codegen_flags: <defaults>
</compile_context>

<pallas_src>
import functools
import math

import jax
import jax.numpy as jnp
from jax import lax
from jax.experimental import pallas as pl
from jax.experimental.pallas import tpu as pltpu


def _stream_kernel(idx_ref, emb_ref, pe_ref, out_ref, *, scale, fold_scale):
    # idx_ref: (MB, 1) int32   -- token ids, one per output row (MB = bt*S)
    # emb_ref: (Epad, Dpad)    -- padded embedding table, VMEM-resident (1 buffer)
    # pe_ref : (S, Dpad) f32   -- positional encoding, VMEM-resident (1 buffer)
    # out_ref: (MB, Dpad)
    mb, d = out_ref.shape
    e_pad = emb_ref.shape[0]
    s = pe_ref.shape[0]
    bt = mb // s

    idx = idx_ref[...]                                            # (MB, 1)

    # One-hot in natural MXU orientation. On the f32 path sqrt(d) is folded in
    # (scaling done by the MXU); on the bf16 path keep 1.0 to avoid rounding
    # the scale to bf16 and apply it on the f32 accumulator instead.
    iota_e = lax.broadcasted_iota(jnp.int32, (mb, e_pad), 1)      # col id == emb row
    hot = jnp.float32(scale) if fold_scale else jnp.float32(1.0)
    onehot = jnp.where(iota_e == idx, hot, jnp.float32(0.0)).astype(emb_ref.dtype)

    gathered = lax.dot_general(
        onehot,
        emb_ref[...],
        dimension_numbers=(((1,), (0,)), ((), ())),               # (MB,E)@(E,D)
        preferred_element_type=jnp.float32,
    )                                                             # (MB, Dpad) f32
    if not fold_scale:
        gathered = gathered * jnp.float32(scale)

    # Broadcast-add the (S, Dpad) PE: leading-dim reshape is free when S % 8 == 0.
    out3 = gathered.reshape(bt, s, d) + pe_ref[...].astype(jnp.float32)[None, :, :]
    out_ref[...] = out3.reshape(mb, d).astype(out_ref.dtype)


@functools.lru_cache(maxsize=None)
def positional_encoding(seq_len: int, emb_dim: int):
    """Exact reproduction of StreamLayer._positionalEncoding (f32), cached.

    Deliberately follows the PyTorch module: the frequency is indexed by the
    full column j (so sin/cos pairs do NOT share a frequency, unlike the
    standard Transformer PE).
    """
    position = jnp.arange(seq_len, dtype=jnp.float32)[:, None]            # (S, 1)
    multiplication = jnp.exp(
        -jnp.arange(0, emb_dim * 2, 2, dtype=jnp.float32)
        * math.log(10000.0) / emb_dim
    )                                                                     # (D,)
    excessive = position * multiplication                                 # (S, D)
    col = jnp.arange(emb_dim)
    pe = jnp.where((col % 2) == 0, jnp.sin(excessive), jnp.cos(excessive))
    return pe.astype(jnp.float32)


def _tpu_topology():
    """(physical VMEM bytes, TensorCores per chip), with safe fallbacks."""
    vmem_cap_bytes = 64 << 20          # conservative: v7x per-TC VMEM
    num_cores = 1                      # v5e/v6e have one TC per chip
    try:
        info = pltpu.get_tpu_info()
        vmem_cap_bytes = int(getattr(info, "vmem_capacity_bytes", vmem_cap_bytes))
        for name in ("num_cores", "core_count", "tensorcores_per_chip",
                     "num_tensorcores"):
            v = getattr(info, name, None)
            if v:
                num_cores = int(v)
                break
    except Exception:
        # TODO(synk): if TpuInfo is unavailable, multi-TC chips fall back to a
        # single-step grid (correct, marginally suboptimal on v7x).
        pass
    return vmem_cap_bytes, num_cores


def _pick_batch_tile(batch, seq_len, d_pad, out_itemsize, row_budget_bytes,
                     num_cores, target_block_bytes=(3 << 20) // 2):
    """Rows per grid step.

    Target an output block of ~1.5 MiB (HBM-writeback bound; >=1 MiB blocks
    reach ~85%+ of roofline vs ~60% at 128-256 KiB), bounded by the VMEM row
    budget. Keep >=2 grid steps only on multi-TC chips; keep bt*S % 8 == 0.
    """
    bytes_per_row_out = d_pad * out_itemsize
    # per-row variable VMEM: out double-buffered + idx double-buffered
    # ((mb,1) int32 lane-pads to 128 lanes in VMEM).
    bytes_per_row_var = 2 * bytes_per_row_out + 2 * 128 * 4

    desired_rows = max(seq_len, target_block_bytes // bytes_per_row_out)
    max_rows_vmem = max(seq_len, row_budget_bytes // bytes_per_row_var)
    desired_bt = max(1, min(desired_rows, max_rows_vmem) // seq_len)

    max_bt = batch
    if num_cores >= 2 and batch >= 2:
        max_bt = batch // 2            # keep grid >= 2 only when it can help

    start = max(1, min(desired_bt, max_bt))
    for bt in range(start, 0, -1):
        if batch % bt == 0 and (bt * seq_len) % 8 == 0:
            return bt
    return batch                       # full-array block (block == array dims)


def stream_layer_forward(stream, emb_weight, seq_len, emb_dim, *, mxu_dtype=None):
    """stream: [B, S] int token ids; emb_weight: [E, D] float. -> [B, S, D].

    mxu_dtype: optionally jnp.bfloat16 to run the table/one-hot through the
    bf16 MXU path (f32 accumulation, sqrt(d) applied post-matmul). Default None
    keeps the table dtype (f32 demo) with sqrt(d) folded into the one-hot.
    """
    B, S = stream.shape
    E, D = emb_weight.shape
    assert S == seq_len and D == emb_dim

    out_dtype = emb_weight.dtype

    # Lane-density: pad D (output stores + MXU N) and E (one-hot / MXU K) to
    # multiples of 128. Zero rows/cols are never selected (ids < E) and padded
    # output columns are sliced off below.
    d_pad = ((D + 127) // 128) * 128
    e_pad = ((E + 127) // 128) * 128

    table = emb_weight if mxu_dtype is None else emb_weight.astype(mxu_dtype)
    if e_pad != E or d_pad != D:
        table = jnp.pad(table, ((0, e_pad - E), (0, d_pad - D)))

    pe = positional_encoding(seq_len, emb_dim)                    # (S, D) f32
    if d_pad != D:
        pe = jnp.pad(pe, ((0, 0), (0, d_pad - D)))                # (S, Dpad)

    t_itemsize = jnp.dtype(table.dtype).itemsize
    o_itemsize = jnp.dtype(out_dtype).itemsize

    vmem_phys, num_cores = _tpu_topology()
    vmem_cap = (vmem_phys * 3) // 4            # headroom for internal scratch

    # Fixed VMEM: table + PE single-buffered, plus a small internal margin.
    fixed_bytes = e_pad * d_pad * t_itemsize + seq_len * d_pad * 4 + (2 << 20)
    row_budget = max(0, vmem_cap - fixed_bytes)

    bt = _pick_batch_tile(B, S, d_pad, o_itemsize, row_budget, num_cores)
    mb = bt * S
    grid_n = B // bt

    idx = stream.astype(jnp.int32).reshape(B * S, 1)              # (B*S, 1)

    fold_scale = table.dtype == jnp.float32
    scale = math.sqrt(float(emb_dim))

    # VMEM budget, capped by physical capacity (never an unreachable number).
    out_bytes = 2 * mb * d_pad * o_itemsize
    idx_bytes = 2 * mb * 128 * 4               # (mb,1) int32 lane-pads to 128
    needed = fixed_bytes + out_bytes + idx_bytes
    vmem_limit = int(min(vmem_cap, max(32 << 20, needed + (4 << 20))))

    kernel = functools.partial(_stream_kernel, scale=scale, fold_scale=fold_scale)

    out_flat = pl.pallas_call(
        kernel,
        out_shape=jax.ShapeDtypeStruct((B * S, d_pad), out_dtype),
        grid_spec=pltpu.PrefetchScalarGridSpec(
            num_scalar_prefetch=0,
            grid=(grid_n,),
            in_specs=[
                # token ids for this row block (double-buffered, tiny)
                pl.BlockSpec((mb, 1), lambda g: (g, 0)),
                # embedding table: constant index -> single buffer
                pl.BlockSpec((e_pad, d_pad), lambda g: (0, 0),
                             pipeline_mode=pl.Buffered(buffer_count=1)),
                # positional encoding (S, Dpad): constant index -> single buffer
                pl.BlockSpec((seq_len, d_pad), lambda g: (0, 0),
                             pipeline_mode=pl.Buffered(buffer_count=1)),
            ],
            out_specs=pl.BlockSpec((mb, d_pad), lambda g: (g, 0)),
        ),
        compiler_params=pltpu.CompilerParams(
            dimension_semantics=("parallel",),
            vmem_limit_bytes=vmem_limit,
        ),
    )(idx, table, pe)

    out = out_flat if d_pad == D else out_flat[:, :D]
    return out.reshape(B, S, D)


if __name__ == "__main__":
    # Small, deterministic configuration. D=128 keeps output stores lane-dense;
    # E=64 exercises the E->128 padding path.
    batch = 4
    seq_len = 16
    emb_num = 64
    emb_dim = 128

    key = jax.random.PRNGKey(0)
    k_emb, k_idx = jax.random.split(key)

    # nn.Embedding default init: N(0, 1).
    emb_weight = jax.random.normal(k_emb, (emb_num, emb_dim), dtype=jnp.float32)
    stream = jax.random.randint(k_idx, (batch, seq_len), 0, emb_num, dtype=jnp.int32)

    out = stream_layer_forward(stream, emb_weight, seq_len, emb_dim)
    out = jax.block_until_ready(out)

    # Pure-JAX reference (embedding lookup * sqrt(d) + PE; eval-mode dropout).
    ref = emb_weight[stream] * math.sqrt(emb_dim) + positional_encoding(
        seq_len, emb_dim
    )[None]
    assert out.shape == (batch, seq_len, emb_dim)
    assert jnp.allclose(out, ref, atol=1e-4, rtol=1e-5), "mismatch vs reference"

    print("KERNEL_OK")
</pallas_src>

<mosaic_0001>
module attributes {stable_mosaic.version = 11 : i64} {
  func.func @_stream_kernel(%arg0: i32, %arg1: memref<64x1xi32, #tpu.memory_space<vmem>>, %arg2: memref<128x128xf32, #tpu.memory_space<vmem>>, %arg3: memref<16x128xf32, #tpu.memory_space<vmem>>, %arg4: memref<64x128xf32, #tpu.memory_space<vmem>>) attributes {dimension_semantics = [#tpu.dimension_semantics<parallel>], iteration_bounds = array<i64: 1>, scalar_prefetch = 0 : i64, scratch_operands = 0 : i64, tpu.core_type = #tpu.core_type<tc>, window_params = [{transform_indices = @transform_0, window_bounds = array<i64: 64, 1>}, {pipeline_mode = #tpu.pipeline_mode<synchronous>, transform_indices = @transform_1, window_bounds = array<i64: 128, 128>}, {pipeline_mode = #tpu.pipeline_mode<synchronous>, transform_indices = @transform_2, window_bounds = array<i64: 16, 128>}, {transform_indices = @transform_3, window_bounds = array<i64: 64, 128>}]} {
    %c0 = arith.constant 0 : index
    %c0_0 = arith.constant 0 : index
    %0 = vector.load %arg1[%c0, %c0_0] : memref<64x1xi32, #tpu.memory_space<vmem>>, vector<64x1xi32>
    %1 = tpu.iota {dimensions = array<i32: 1>} : vector<64x128xi32>
    %2 = vector.broadcast %0 : vector<64x1xi32> to vector<64x128xi32>
    %3 = arith.cmpi eq, %1, %2 : vector<64x128xi32>
    %cst = arith.constant 11.3137083 : f32
    %cst_1 = arith.constant 0.000000e+00 : f32
    %4 = vector.broadcast %cst : f32 to vector<64x128xf32>
    %5 = vector.broadcast %cst_1 : f32 to vector<64x128xf32>
    %6 = arith.select %3, %4, %5 : vector<64x128xi1>, vector<64x128xf32>
    %c0_2 = arith.constant 0 : index
    %c0_3 = arith.constant 0 : index
    %7 = vector.load %arg2[%c0_2, %c0_3] : memref<128x128xf32, #tpu.memory_space<vmem>>, vector<128x128xf32>
    %cst_4 = arith.constant dense<0.000000e+00> : vector<64x128xf32>
    %8 = tpu.matmul %6, %7, %cst_4 {dimension_numbers = #tpu.dot_dimension_numbers<[1], [0], [0], [1], [0, 0, 1, 1], [], []>} : vector<64x128xf32>, vector<128x128xf32>, vector<64x128xf32> -> vector<64x128xf32>
    %9 = vector.shape_cast %8 : vector<64x128xf32> to vector<4x16x128xf32>
    %c0_5 = arith.constant 0 : index
    %c0_6 = arith.constant 0 : index
    %10 = vector.load %arg3[%c0_5, %c0_6] : memref<16x128xf32, #tpu.memory_space<vmem>>, vector<16x128xf32>
    %11 = vector.shape_cast %10 : vector<16x128xf32> to vector<1x16x128xf32>
    %12 = vector.broadcast %11 : vector<1x16x128xf32> to vector<4x16x128xf32>
    %13 = arith.addf %9, %12 : vector<4x16x128xf32>
    %14 = vector.shape_cast %13 : vector<4x16x128xf32> to vector<64x128xf32>
    %c0_7 = arith.constant 0 : index
    %c0_8 = arith.constant 0 : index
    %15 = vector.load %arg4[%c0_7, %c0_8] : memref<64x128xf32, #tpu.memory_space<vmem>>, vector<64x128xf32>
    tpu.vector_store %arg4[%c0_7, %c0_8], %14 {strides = array<i32>} : memref<64x128xf32, #tpu.memory_space<vmem>>, vector<64x128xf32>,
    return
  }
  func.func @transform_0(%arg0: i32) -> (i32, i32) {
    %c0_i32 = arith.constant 0 : i32
    %c0_i32_0 = arith.constant 0 : i32
    return %arg0, %c0_i32 : i32, i32
  }
  func.func @transform_1(%arg0: i32) -> (i32, i32) {
    %c0_i32 = arith.constant 0 : i32
    %c0_i32_0 = arith.constant 0 : i32
    %c0_i32_1 = arith.constant 0 : i32
    return %c0_i32, %c0_i32_0 : i32, i32
  }
  func.func @transform_2(%arg0: i32) -> (i32, i32) {
    %c0_i32 = arith.constant 0 : i32
    %c0_i32_0 = arith.constant 0 : i32
    %c0_i32_1 = arith.constant 0 : i32
    return %c0_i32, %c0_i32_0 : i32, i32
  }
  func.func @transform_3(%arg0: i32) -> (i32, i32) {
    %c0_i32 = arith.constant 0 : i32
    %c0_i32_0 = arith.constant 0 : i32
    return %arg0, %c0_i32 : i32, i32
  }
}

</mosaic_0001>

<bundles_post_ra>
// kernel: tpu_custom_call.1
= control target key start
LH: loop header
LB: loop body
LE: loop exit
PB: predicated region body
PF: predicated region fallthrough
CT: control target
= control target key end

     0   :  { %8 = vsyncpa [#allocation3], 0  ;;  %s360_s0 = inlined_call_operand.vmem [shape: s32[64,1], index: 0, kind: input, shape index: {}]   ;;  %s361_s1 = inlined_call_operand.hbm [shape: f32[128,128], index: 1, kind: input, shape index: {}]   ;;  %s362_s2 = inlined_call_operand.vmem [shape: f32[16,128], index: 2, kind: input, shape index: {}]   ;;  %s363_s3 = inlined_call_operand.hbm [shape: f32[64,128], index: 3, kind: output, shape index: {}]  }
   0x1   :  { %9 = vsyncpa [#allocation4], 0  ;;  %s16_s14 = sshll.u32 %s361_s1, 4  ;;  %s292_s15 = smov [#allocation2]   ;;  %s17_s14 = int_to_ptr.hbm [resolvable:$true] %s16_s14 }
   0x2   :  { %s18_s16 = sshll.u32 %s292_s15, 4  ;;  %s293_s17 = smov 128   ;;  %s19_s16 = int_to_ptr.vmem [resolvable:$true] %s18_s16 }
   0x3   :  { %s294_s18 = smov 8  }
   0x4   :  { %24 = dma.hbm_to_vmem [thread:$0]  %s17_s14, 2048, %s19_s16, [#allocation3], %s293_s17, %s293_s17, %s294_s18  }
   0x5   :  { %288 = dma.done.wait [#allocation3], 2048  }
   0x6   :  { %289 = vsyncadd [#allocation3], 4294965248  ;;  %v295_v0 = vmov 0   ;;  %v35_v1 = vld [vmem:[%s360_s0 + $0x20] sm:$0xff]  ;;  %v36_v3 = vld [vmem:[%s360_s0 + $0x28] sm:$0xff]  ;;  %v39_v25 = vlaneseq  ;;  %s297_s10 = smov [#allocation5]  }
   0x7   :  { %238 = vset.pattern.permute.xlu1 %v295_v0  ;;  %237 = vset.pattern.permute.xlu0 %v295_v0  ;;  %v31_v2 = vld [vmem:[%s360_s0] sm:$0xff]  ;;  %v96_v4 = vld [vmem:[#allocation2 + $0x78] sm:$0xff]  ;;  %v95_v5 = vld [vmem:[#allocation2 + $0x70] sm:$0xff]  ;;  %v296_v29 = vmov 11.313708   ;;  %s160_s11 = sshll.u32 %s297_s10, 4  ;;  %s161_s11 = int_to_ptr.vmem [resolvable:$true] %s160_s11 }
   0x8   :  { %239 = vset.pattern.permute.xlu2 %v295_v0  ;;  %54 = vperm.xlu0 %237, %v35_v1   ;;  %v94_v6 = vld [vmem:[#allocation2 + $0x68] sm:$0xff]  ;;  %v37_v7 = vld [vmem:[%s360_s0 + $0x30] sm:$0xff]  ;;  %v93_v9 = vld [vmem:[#allocation2 + $0x60] sm:$0xff]  ;;  %v40_v26 = vand.u32 127, %v39_v25  ;;  %s162_s14 = sshll.u32 %s363_s3, 4  ;;  %s163_s14 = int_to_ptr.hbm [resolvable:$true] %s162_s14 }
   0x9   :  { %42 = vperm.xlu1 %238, %v31_v2   ;;  %57 = vperm.xlu2 %239, %v36_v3   ;;  %v33_v8 = vld [vmem:[%s360_s0 + $0x10] sm:$0xff]  ;;  %v38_v10 = vld [vmem:[%s360_s0 + $0x38] sm:$0xff]  ;;  %v90_v13 = vld [vmem:[#allocation2 + $0x48] sm:$0xff] }
   0xa   :  { %184 = vmatpush.msra.mxu2 %v96_v4  ;;  %97 = vmatpush.msra.mxu0 %v96_v4  ;;  %v92_v11 = vld [vmem:[#allocation2 + $0x58] sm:$0xff]  ;;  %v91_v12 = vld [vmem:[#allocation2 + $0x50] sm:$0xff]  ;;  %v32_v14 = vld [vmem:[%s360_s0 + $0x8] sm:$0xff] }
   0xb   :  { %183 = vmatpush.msra.mxu1 %v96_v4  ;;  %185 = vmatpush.msra.mxu3 %v96_v4  ;;  %v34_v15 = vld [vmem:[%s360_s0 + $0x18] sm:$0xff]  ;;  %v89_v16 = vld [vmem:[#allocation2 + $0x40] sm:$0xff]  ;;  %v87_v18 = vld [vmem:[#allocation2 + $0x30] sm:$0xff] }
   0xc   :  { %187 = vmatpush.msra.mxu2 %v95_v5  ;;  %98 = vmatpush.msra.mxu0 %v95_v5  ;;  %v88_v17 = vld [vmem:[#allocation2 + $0x38] sm:$0xff]  ;;  %v86_v19 = vld [vmem:[#allocation2 + $0x28] sm:$0xff]  ;;  %v85_v20 = vld [vmem:[#allocation2 + $0x20] sm:$0xff] }
   0xd   :  { %186 = vmatpush.msra.mxu1 %v95_v5  ;;  %188 = vmatpush.msra.mxu3 %v95_v5  ;;  %v84_v21 = vld [vmem:[#allocation2 + $0x18] sm:$0xff]  ;;  %v83_v22 = vld [vmem:[#allocation2 + $0x10] sm:$0xff]  ;;  %v82_v23 = vld [vmem:[#allocation2 + $0x8] sm:$0xff] }
   0xe   :  { %190 = vmatpush.msra.mxu2 %v94_v6  ;;  %99 = vmatpush.msra.mxu0 %v94_v6  ;;  %v81_v24 = vld [vmem:[#allocation2] sm:$0xff]  ;;  %v139_v43 = vld [vmem:[%s362_s2 + $0x8] sm:$0xff] }
   0xf   :  { %189 = vmatpush.msra.mxu1 %v94_v6  ;;  %191 = vmatpush.msra.mxu3 %v94_v6  ;;  %v138_v36 = vld [vmem:[%s362_s2] sm:$0xff] }
  0x10   :  { %60 = vperm.xlu0 %237, %v37_v7   ;;  %193 = vmatpush.msra.mxu2 %v93_v9 }
  0x11   :  { %48 = vperm.xlu1 %238, %v33_v8   ;;  %63 = vperm.xlu2 %239, %v38_v10  }
  0x12   :  { %100 = vmatpush.msra.mxu0 %v93_v9  ;;  %196 = vmatpush.msra.mxu2 %v92_v11 }
  0x13   :  { %192 = vmatpush.msra.mxu1 %v93_v9  ;;  %194 = vmatpush.msra.mxu3 %v93_v9 }
  0x14   :  { %101 = vmatpush.msra.mxu0 %v92_v11  ;;  %199 = vmatpush.msra.mxu2 %v91_v12 }
  0x15   :  { %195 = vmatpush.msra.mxu1 %v92_v11  ;;  %197 = vmatpush.msra.mxu3 %v92_v11 }
  0x16   :  { %102 = vmatpush.msra.mxu0 %v91_v12  ;;  %202 = vmatpush.msra.mxu2 %v90_v13 }
  0x17   :  { %198 = vmatpush.msra.mxu1 %v91_v12  ;;  %200 = vmatpush.msra.mxu3 %v91_v12 }
  0x18   :  { %45 = vperm.xlu0 %237, %v32_v14   ;;  %205 = vmatpush.msra.mxu2 %v89_v16 }
  0x19   :  { %51 = vperm.xlu1 %238, %v34_v15   ;;  %103 = vmatpush.msra.mxu0 %v90_v13 }
  0x1a   :  { %201 = vmatpush.msra.mxu1 %v90_v13  ;;  %208 = vmatpush.msra.mxu2 %v88_v17 }
  0x1b   :  { %203 = vmatpush.msra.mxu3 %v90_v13  ;;  %104 = vmatpush.msra.mxu0 %v89_v16 }
  0x1c   :  { %204 = vmatpush.msra.mxu1 %v89_v16  ;;  %211 = vmatpush.msra.mxu2 %v87_v18 }
  0x1d   :  { %206 = vmatpush.msra.mxu3 %v89_v16  ;;  %105 = vmatpush.msra.mxu0 %v88_v17 }
  0x1e   :  { %207 = vmatpush.msra.mxu1 %v88_v17  ;;  %214 = vmatpush.msra.mxu2 %v86_v19 }
  0x1f   :  { %209 = vmatpush.msra.mxu3 %v88_v17  ;;  %106 = vmatpush.msra.mxu0 %v87_v18 }
  0x20   :  { %210 = vmatpush.msra.mxu1 %v87_v18  ;;  %217 = vmatpush.msra.mxu2 %v85_v20 }
  0x21   :  { %212 = vmatpush.msra.mxu3 %v87_v18  ;;  %107 = vmatpush.msra.mxu0 %v86_v19 }
  0x22   :  { %213 = vmatpush.msra.mxu1 %v86_v19  ;;  %220 = vmatpush.msra.mxu2 %v84_v21 }
  0x23   :  { %215 = vmatpush.msra.mxu3 %v86_v19  ;;  %108 = vmatpush.msra.mxu0 %v85_v20 }
  0x24   :  { %216 = vmatpush.msra.mxu1 %v85_v20  ;;  %223 = vmatpush.msra.mxu2 %v83_v22 }
  0x25   :  { %218 = vmatpush.msra.mxu3 %v85_v20  ;;  %109 = vmatpush.msra.mxu0 %v84_v21 }
  0x26   :  { %219 = vmatpush.msra.mxu1 %v84_v21  ;;  %226 = vmatpush.msra.mxu2 %v82_v23 }
  0x27   :  { %221 = vmatpush.msra.mxu3 %v84_v21  ;;  %110 = vmatpush.msra.mxu0 %v83_v22 }
  0x28   :  { %222 = vmatpush.msra.mxu1 %v83_v22  ;;  %229 = vmatpush.msra.mxu2 %v81_v24 }
  0x29   :  { %224 = vmatpush.msra.mxu3 %v83_v22  ;;  %111 = vmatpush.msra.mxu0 %v82_v23 }
  0x2a   :  { %225 = vmatpush.msra.mxu1 %v82_v23 }
  0x2b   :  { %227 = vmatpush.msra.mxu3 %v82_v23  ;;  %112 = vmatpush.msra.mxu0 %v81_v24 }
  0x2c   :  { %228 = vmatpush.msra.mxu1 %v81_v24 }
  0x2d   :  { %230 = vmatpush.msra.mxu3 %v81_v24 }
  0x63   :  { %v58_v30 = vpop.permute.xlu2 %57 }
  0x64   :  { %vm70_vm2 = vcmp.eq.s32.totalorder %v40_v26, %v58_v30 }
  0x6b   :  { %v64_v33 = vpop.permute.xlu2 %63 }
  0x6c   :  { %vm72_vm7 = vcmp.eq.s32.totalorder %v40_v26, %v64_v33 }
  0x7a   :  { %v55_v27 = vpop.permute.xlu0 %54 }
  0x7b   :  { %v43_v28 = vpop.permute.xlu1 %42  ;;  %vm69_vm0 = vcmp.eq.s32.totalorder %v40_v26, %v55_v27 }
  0x7c   :  { %vm65_vm1 = vcmp.eq.s32.totalorder %v40_v26, %v43_v28  ;;  %179 = vmatmul.msk.f32.vlgmr.msra.gmra.mxu2 %vm69_vm0, %v296_v29 }
  0x7d   :  { %175 = vmatmul.msk.f32.vlgmr.msra.gmra.mxu0 %vm65_vm1, %v296_v29 }
  0x82   :  { %v61_v31 = vpop.permute.xlu0 %60 }
  0x83   :  { %v49_v32 = vpop.permute.xlu1 %48  ;;  %vm71_vm3 = vcmp.eq.s32.totalorder %v40_v26, %v61_v31 }
  0x84   :  { %vm67_vm4 = vcmp.eq.s32.totalorder %v40_v26, %v49_v32  ;;  %180 = vmatmul.msk.f32.gmra.mxu2 %vm70_vm2, %v296_v29  ;;  %181 = vmatmul.msk.f32.vlgmr.msra.gmra.mxu3 %vm71_vm3, %v296_v29 }
  0x85   :  { %177 = vmatmul.msk.f32.vlgmr.msra.gmra.mxu1 %vm67_vm4, %v296_v29 }
  0x8a   :  { %v46_v34 = vpop.permute.xlu0 %45 }
  0x8b   :  { %v52_v35 = vpop.permute.xlu1 %51  ;;  %vm66_vm5 = vcmp.eq.s32.totalorder %v40_v26, %v46_v34 }
  0x8c   :  { %vm68_vm6 = vcmp.eq.s32.totalorder %v40_v26, %v52_v35  ;;  %176 = vmatmul.msk.f32.gmra.mxu0 %vm66_vm5, %v296_v29  ;;  %182 = vmatmul.msk.f32.gmra.mxu3 %vm72_vm7, %v296_v29 }
  0x8d   :  { %178 = vmatmul.msk.f32.gmra.mxu1 %vm68_vm6, %v296_v29 }
  0xfa   :  { %v114_v37 = vpop.f32.mrf.mxu0 }
  0xfb   :  { %v140_v38 = vadd.f32 %v138_v36, %v114_v37 }
  0xfd   :  { %148 = vst [vmem:[#allocation5] sm:$0xff] %v140_v38 }
  0xff   :  { %v126_v39 = vpop.f32.mrf.mxu2 }
 0x100   :  { %v144_v40 = vadd.f32 %v138_v36, %v126_v39 }
 0x102   :  { %v120_v41 = vpop.f32.mrf.mxu1  ;;  %152 = vst [vmem:[#allocation5 + $0x20] sm:$0xff] %v144_v40 }
 0x103   :  { %v142_v42 = vadd.f32 %v138_v36, %v120_v41 }
 0x105   :  { %150 = vst [vmem:[#allocation5 + $0x10] sm:$0xff] %v142_v42 }
 0x107   :  { %v129_v44 = vpop.f32.mrf.mxu2  ;;  %v132_v46 = vpop.f32.mrf.mxu3 }
 0x108   :  { %v145_v45 = vadd.f32 %v139_v43, %v129_v44  ;;  %v146_v47 = vadd.f32 %v138_v36, %v132_v46 }
 0x109   :  { %v117_v48 = vpop.f32.mrf.mxu0 }
 0x10a   :  { %v123_v49 = vpop.f32.mrf.mxu1  ;;  %153 = vst [vmem:[#allocation5 + $0x28] sm:$0xff] %v145_v45  ;;  %v141_v50 = vadd.f32 %v139_v43, %v117_v48 }
 0x10b   :  { %v143_v51 = vadd.f32 %v139_v43, %v123_v49  ;;  %154 = vst [vmem:[#allocation5 + $0x30] sm:$0xff] %v146_v47 }
 0x10c   :  { %149 = vst [vmem:[#allocation5 + $0x8] sm:$0xff] %v141_v50 }
 0x10d   :  { %151 = vst [vmem:[#allocation5 + $0x18] sm:$0xff] %v143_v51 }
 0x10f   :  { %v135_v52 = vpop.f32.mrf.mxu3 }
 0x110   :  { %v147_v53 = vadd.f32 %v139_v43, %v135_v52 }
 0x112   :  { %155 = vst [vmem:[#allocation5 + $0x38] sm:$0xff] %v147_v53 }
 0x113   :  { %168 = dma.vmem_to_hbm [thread:$0]  %s161_s11, 1024, %s163_s14, [#allocation4], %s293_s17, %s293_s17, %s294_s18  }
 0x114   :  { %290 = dma.done.wait [#allocation4], 1024  }
 0x115   :  { %291 = vsyncadd [#allocation4], 4294966272 }
 0x116   :  { %173 = vsyncpa [#allocation3], 1 }
 0x117   :  { %174 = vsyncpa [#allocation4], 1 }

</bundles_post_ra>
